<compile_context>
chip_gen: v7x
topology: tpu7x:2x2x1
jax: 0.10.0
libtpu: 0.0.40
codegen_flags: <defaults>
</compile_context>

<pallas_src>
import functools

import numpy as np
import jax
import jax.numpy as jnp
from jax.experimental import pallas as pl
from jax.experimental.pallas import tpu as pltpu


# -----------------------------------------------------------------------------
# One-time parameter preparation (outside jit): layout/dtype only, no per-step cost.
# -----------------------------------------------------------------------------
def prepare_params(params, batch):
    conv_w = np.asarray(params["conv_w"], np.float32)       # (Cout, Cin, KH, KW)
    conv_b = np.asarray(params["conv_b"], np.float32)       # (Cout,)
    fc1_w = np.asarray(params["fc1_w"], np.float32)         # (128, Cout*Ho*Wo)
    fc1_b = np.asarray(params["fc1_b"], np.float32)         # (128,)
    fc2_w = np.asarray(params["fc2_w"], np.float32)         # (n_out, 128)
    fc2_b = np.asarray(params["fc2_b"], np.float32)         # (n_out,)

    Cout, Cin, KH, KW = conv_w.shape
    assert KH == KW and KH % 2 == 1, "square odd kernel expected"
    B = batch
    DR, DC = (KH + 1) // 2, (KW + 1) // 2
    ncol = Cin * DR * 2 * DC * 2                              # tap-slab rows per batch block

    # Block-diagonal (over batch), tap-scattered conv+pool weight.
    #   row (g, co, b)            -> g*Cout*B + co*B + b     (g = pool offset pr*2+pc)
    #   col (b, ci, dr, ph, dc, pw) -> b*ncol + ((((ci*DR+dr)*2+ph)*DC+dc)*2+pw
    w_big = np.zeros((4 * Cout * B, B * ncol), np.float32)
    for g, (pr, pc) in enumerate(((0, 0), (0, 1), (1, 0), (1, 1))):
        for kh in range(KH):
            for kw in range(KW):
                r, c = pr + kh, pc + kw
                dr, ph, dc, pw = r // 2, r % 2, c // 2, c % 2
                for ci in range(Cin):
                    col = ((((ci * DR + dr) * 2 + ph) * DC + dc) * 2 + pw)
                    for b in range(B):
                        rows = g * Cout * B + np.arange(Cout) * B + b
                        w_big[rows, b * ncol + col] = conv_w[:, ci, kh, kw]

    n_fc1 = fc1_w.shape[0]
    HW = fc1_w.shape[1] // Cout
    return {
        "w_big": jnp.asarray(w_big, jnp.bfloat16),                          # (4*Cout*B, B*ncol)
        "bc": jnp.asarray(np.repeat(conv_b, B).reshape(Cout * B, 1)),       # f32 (Cout*B, 1)
        "w1": jnp.asarray(fc1_w.T.reshape(Cout, HW, n_fc1), jnp.bfloat16),  # (Cout, HW, 128)
        "b1": jnp.asarray(fc1_b.reshape(1, n_fc1)),                         # f32 (1, 128)
        "w2": jnp.asarray(fc2_w.T),                                         # f32 (128, n_out)
        "b2": jnp.asarray(fc2_b.reshape(1, -1)),                            # f32 (1, n_out)
    }


# -----------------------------------------------------------------------------
# Tiny XLA prologue (single fusion, bf16):
#   Q[(b,ci,dr,ph,dc,pw), i*Wo+j] = x_pad[b, ci, 2*(i+dr)+ph, 2*(j+dc)+pw]
# i.e. every (parity, half-offset) tap of the 2x2-strided neighborhood, lane-dense on (i,j).
# -----------------------------------------------------------------------------
def _tap_slab(x, KH, KW):
    B, Cin, H, W = x.shape
    assert H % 2 == 0 and W % 2 == 0
    pad_h, pad_w = (KH - 1) // 2, (KW - 1) // 2
    Ho, Wo = H // 2, W // 2
    Hq, Wq = (H + 2 * pad_h) // 2, (W + 2 * pad_w) // 2
    DR, DC = (KH + 1) // 2, (KW + 1) // 2
    xp = jnp.pad(x.astype(jnp.bfloat16),
                 ((0, 0), (0, 0), (pad_h, pad_h), (pad_w, pad_w)))
    xr = xp.reshape(B, Cin, Hq, 2, Wq, 2)                     # parity split of rows/cols
    parts = [xr[:, :, dr:dr + Ho, :, dc:dc + Wo, :]
             for dr in range(DR) for dc in range(DC)]
    s = jnp.stack(parts, 0).reshape(DR, DC, B, Cin, Ho, 2, Wo, 2)
    q = jnp.transpose(s, (2, 3, 0, 5, 1, 7, 4, 6))            # (b,ci,dr,ph,dc,pw,i,j)
    return q.reshape(B * Cin * DR * 2 * DC * 2, Ho * Wo)


# -----------------------------------------------------------------------------
# Fused kernel: conv(+pool) matmul -> bias -> ReLU -> fc1 (bf16, f32 acc) -> ReLU -> fc2
# -----------------------------------------------------------------------------
def _make_kernel(B, Cout, HW, n_fc1):
    GB = Cout * B   # rows of the pooled slab, ordered (co, b)

    def kernel(q_ref, wbig_ref, bc_ref, w1_hbm, b1_ref, w2_ref, b2_ref,
               o_ref, w1_vmem, x_scr, sem):
        # Start the big fc1-weight DMA immediately; it overlaps with the conv below.
        w1_cp = pltpu.make_async_copy(w1_hbm, w1_vmem, sem)
        w1_cp.start()

        # conv for all 4 pool offsets, all channels and both batches: ONE matmul.
        y = jnp.dot(wbig_ref[...], q_ref[...],
                    preferred_element_type=jnp.float32)        # (4*GB, HW)
        # 2x2 max-pool = max over the 4 vreg-aligned row groups; bias/ReLU after the max
        # (bias is identical across groups and ReLU is monotone, so this matches
        #  pool(relu(conv + bias)) of the PyTorch module).
        m0 = jnp.maximum(y[0:GB], y[GB:2 * GB])
        m1 = jnp.maximum(y[2 * GB:3 * GB], y[3 * GB:4 * GB])
        pooled = jnp.maximum(jnp.maximum(m0, m1) + bc_ref[...], 0.0)   # (GB, HW) f32
        # Rows are already ordered (co, b): one aligned bf16 store, no relayout.
        x_scr[...] = pooled.astype(jnp.bfloat16)

        # fc1: sum over conv channels of (B, HW) @ (HW, 128) with f32 accumulation.
        w1_cp.wait()
        acc = jnp.zeros((B, n_fc1), jnp.float32)
        for co in range(Cout):
            acc = acc + jnp.dot(x_scr[co * B:(co + 1) * B, :], w1_vmem[co],
                                preferred_element_type=jnp.float32)
        h = jnp.maximum(acc + b1_ref[...], 0.0)

        # fc2 (tiny, f32).
        o = jnp.dot(h, w2_ref[...], preferred_element_type=jnp.float32) + b2_ref[...]
        o_ref[...] = o.astype(o_ref.dtype)

    return kernel


def cnn1_forward(x, prep):
    B, Cin, H, W = x.shape
    w1 = prep["w1"]
    Cout, HW, n_fc1 = w1.shape
    w_big = prep["w_big"]
    ncol = w_big.shape[1] // B
    DR = int(round((ncol / (4 * Cin)) ** 0.5))
    KH = 2 * DR - 1
    assert ncol == 4 * Cin * DR * DR and w_big.shape[0] == 4 * Cout * B
    Ho, Wo = H // 2, W // 2
    assert Ho * Wo == HW, "module expects 32x32 inputs (fc1 = hidden*16*16)"
    n_out = prep["w2"].shape[1]

    q = _tap_slab(x, KH, KH)                                  # (B*Cin*4*DR*DR, HW) bf16

    vmem = pl.BlockSpec(memory_space=pltpu.MemorySpace.VMEM)
    cost = pl.CostEstimate(
        flops=2 * (w_big.shape[0] * w_big.shape[1] * HW
                   + B * Cout * HW * n_fc1 + B * n_fc1 * n_out),
        transcendentals=0,
        bytes_accessed=(q.size * 2 + w_big.size * 2 + w1.size * 2
                        + prep["w2"].size * 4
                        + (Cout * B + n_fc1 + n_out) * 4 + B * n_out * 4),
    )

    return pl.pallas_call(
        _make_kernel(B, Cout, HW, n_fc1),
        out_shape=jax.ShapeDtypeStruct((B, n_out), x.dtype),
        in_specs=[vmem, vmem, vmem,
                  pl.BlockSpec(memory_space=pl.ANY),          # fc1 weight: manual DMA
                  vmem, vmem, vmem],
        out_specs=vmem,
        scratch_shapes=[
            pltpu.VMEM((Cout, HW, n_fc1), jnp.bfloat16),      # fc1 weight landing buffer
            pltpu.VMEM((Cout * B, HW), jnp.bfloat16),         # pooled activations, rows (co, b)
            pltpu.SemaphoreType.DMA(()),
        ],
        cost_estimate=cost,
    )(q, w_big, prep["bc"], w1, prep["b1"], prep["w2"], prep["b2"])


# -----------------------------------------------------------------------------
# Pure-JAX reference (same math as the PyTorch module), f32.
# -----------------------------------------------------------------------------
def reference_forward(x, params):
    pad = (params["conv_w"].shape[2] - 1) // 2
    y = jax.lax.conv_general_dilated(
        x, params["conv_w"], window_strides=(1, 1),
        padding=[(pad, pad), (pad, pad)],
        dimension_numbers=("NCHW", "OIHW", "NCHW"),
        precision=jax.lax.Precision.HIGHEST)
    y = y + params["conv_b"][None, :, None, None]
    y = jnp.maximum(y, 0.0)
    y = jax.lax.reduce_window(y, -jnp.inf, jax.lax.max,
                              (1, 1, 2, 2), (1, 1, 2, 2), "VALID")
    y = y.reshape(y.shape[0], -1)
    y = jnp.maximum(y @ params["fc1_w"].T + params["fc1_b"], 0.0)
    return y @ params["fc2_w"].T + params["fc2_b"]


if __name__ == "__main__":
    hidden_size, kernel_size = 8, 3
    B, Cin, H, W = 2, 3, 32, 32          # fc1 expects hidden*16*16 -> 32x32 input

    key = jax.random.PRNGKey(0)
    k = jax.random.split(key, 6)
    x = jax.random.normal(k[0], (B, Cin, H, W), jnp.float32)

    params = {
        "conv_w": jax.random.normal(k[1], (hidden_size, Cin, kernel_size, kernel_size),
                                    jnp.float32) / jnp.sqrt(Cin * kernel_size * kernel_size),
        "conv_b": jax.random.normal(k[2], (hidden_size,), jnp.float32) * 0.1,
        "fc1_w": jax.random.normal(k[3], (128, hidden_size * 16 * 16),
                                   jnp.float32) / jnp.sqrt(hidden_size * 16 * 16),
        "fc1_b": jax.random.normal(k[4], (128,), jnp.float32) * 0.1,
        "fc2_w": jax.random.normal(k[5], (3, 128), jnp.float32) / jnp.sqrt(128),
        "fc2_b": jnp.zeros((3,), jnp.float32),
    }

    prep = prepare_params(params, batch=B)     # one-time layout/dtype prep (outside jit)

    fwd = jax.jit(cnn1_forward)
    out = jax.block_until_ready(fwd(x, prep))

    ref = reference_forward(x, params)
    assert out.shape == (B, 3), out.shape
    # bf16 conv + bf16 fc1 with f32 accumulation -> bf16-class error on O(1) outputs.
    assert jnp.allclose(out, ref, rtol=2e-2, atol=3e-2), (out, ref)

    print("KERNEL_OK")
</pallas_src>

<mosaic_0001>
module attributes {stable_mosaic.version = 11 : i64} {
  func.func @kernel(%arg0: memref<96x256xbf16, #tpu.memory_space<vmem>>, %arg1: memref<64x96xbf16, #tpu.memory_space<vmem>>, %arg2: memref<16x1xf32, #tpu.memory_space<vmem>>, %arg3: memref<8x256x128xbf16, #tpu.memory_space<any>>, %arg4: memref<1x128xf32, #tpu.memory_space<vmem>>, %arg5: memref<128x3xf32, #tpu.memory_space<vmem>>, %arg6: memref<1x3xf32, #tpu.memory_space<vmem>>, %arg7: memref<2x3xf32, #tpu.memory_space<vmem>>, %arg8: memref<8x256x128xbf16, #tpu.memory_space<vmem>>, %arg9: memref<16x256xbf16, #tpu.memory_space<vmem>>, %arg10: memref<!tpu.dma_semaphore, #tpu.memory_space<semaphore_mem>>) attributes {dimension_semantics = [], scalar_prefetch = 0 : i64, scratch_operands = 3 : i64, tpu.core_type = #tpu.core_type<tc>} {
    tpu.enqueue_dma source(%arg3 : memref<8x256x128xbf16, #tpu.memory_space<any>>) target(%arg8 : memref<8x256x128xbf16, #tpu.memory_space<vmem>>) target_semaphore(%arg10 : memref<!tpu.dma_semaphore, #tpu.memory_space<semaphore_mem>>)
    %c0 = arith.constant 0 : index
    %c0_0 = arith.constant 0 : index
    %0 = vector.load %arg1[%c0, %c0_0] : memref<64x96xbf16, #tpu.memory_space<vmem>>, vector<64x96xbf16>
    %c0_1 = arith.constant 0 : index
    %c0_2 = arith.constant 0 : index
    %1 = vector.load %arg0[%c0_1, %c0_2] : memref<96x256xbf16, #tpu.memory_space<vmem>>, vector<96x256xbf16>
    %cst = arith.constant dense<0.000000e+00> : vector<64x256xf32>
    %2 = tpu.matmul %0, %1, %cst {dimension_numbers = #tpu.dot_dimension_numbers<[1], [0], [0], [1], [0, 0, 1, 1], [], []>} : vector<64x96xbf16>, vector<96x256xbf16>, vector<64x256xf32> -> vector<64x256xf32>
    %3 = vector.extract_strided_slice %2 {offsets = [0, 0], sizes = [16, 256], strides = [1, 1]} : vector<64x256xf32> to vector<16x256xf32>
    %4 = vector.extract_strided_slice %2 {offsets = [16, 0], sizes = [16, 256], strides = [1, 1]} : vector<64x256xf32> to vector<16x256xf32>
    %5 = arith.maximumf %3, %4 : vector<16x256xf32>
    %6 = vector.extract_strided_slice %2 {offsets = [32, 0], sizes = [16, 256], strides = [1, 1]} : vector<64x256xf32> to vector<16x256xf32>
    %7 = vector.extract_strided_slice %2 {offsets = [48, 0], sizes = [16, 256], strides = [1, 1]} : vector<64x256xf32> to vector<16x256xf32>
    %8 = arith.maximumf %6, %7 : vector<16x256xf32>
    %9 = arith.maximumf %5, %8 : vector<16x256xf32>
    %c0_3 = arith.constant 0 : index
    %c0_4 = arith.constant 0 : index
    %10 = vector.load %arg2[%c0_3, %c0_4] : memref<16x1xf32, #tpu.memory_space<vmem>>, vector<16x1xf32>
    %11 = vector.broadcast %10 : vector<16x1xf32> to vector<16x256xf32>
    %12 = arith.addf %9, %11 : vector<16x256xf32>
    %cst_5 = arith.constant 0.000000e+00 : f32
    %13 = vector.broadcast %cst_5 : f32 to vector<16x256xf32>
    %14 = arith.maximumf %12, %13 : vector<16x256xf32>
    %15 = arith.truncf %14 : vector<16x256xf32> to vector<16x256xbf16>
    %c0_6 = arith.constant 0 : index
    %c0_7 = arith.constant 0 : index
    %16 = vector.load %arg9[%c0_6, %c0_7] : memref<16x256xbf16, #tpu.memory_space<vmem>>, vector<16x256xbf16>
    tpu.vector_store %arg9[%c0_6, %c0_7], %15 {strides = array<i32>} : memref<16x256xbf16, #tpu.memory_space<vmem>>, vector<16x256xbf16>,
    tpu.wait_dma2 semaphore(%arg10 : memref<!tpu.dma_semaphore, #tpu.memory_space<semaphore_mem>>) src(%arg3 : memref<8x256x128xbf16, #tpu.memory_space<any>>) dst(%arg8 : memref<8x256x128xbf16, #tpu.memory_space<vmem>>)
    %cst_8 = arith.constant 0.000000e+00 : f32
    %17 = vector.broadcast %cst_8 : f32 to vector<2x128xf32>
    %c0_9 = arith.constant 0 : index
    %c0_10 = arith.constant 0 : index
    %18 = vector.load %arg9[%c0_9, %c0_10] : memref<16x256xbf16, #tpu.memory_space<vmem>>, vector<2x256xbf16>
    %c0_11 = arith.constant 0 : index
    %c0_12 = arith.constant 0 : index
    %c0_13 = arith.constant 0 : index
    %19 = vector.load %arg8[%c0_11, %c0_12, %c0_13] : memref<8x256x128xbf16, #tpu.memory_space<vmem>>, vector<1x256x128xbf16>
    %20 = vector.shape_cast %19 : vector<1x256x128xbf16> to vector<256x128xbf16>
    %cst_14 = arith.constant dense<0.000000e+00> : vector<2x128xf32>
    %21 = tpu.matmul %18, %20, %cst_14 {dimension_numbers = #tpu.dot_dimension_numbers<[1], [0], [0], [1], [0, 0, 1, 1], [], []>} : vector<2x256xbf16>, vector<256x128xbf16>, vector<2x128xf32> -> vector<2x128xf32>
    %22 = arith.addf %17, %21 : vector<2x128xf32>
    %c2 = arith.constant 2 : index
    %c0_15 = arith.constant 0 : index
    %23 = vector.load %arg9[%c2, %c0_15] : memref<16x256xbf16, #tpu.memory_space<vmem>>, vector<2x256xbf16>
    %c1 = arith.constant 1 : index
    %c0_16 = arith.constant 0 : index
    %c0_17 = arith.constant 0 : index
    %24 = vector.load %arg8[%c1, %c0_16, %c0_17] : memref<8x256x128xbf16, #tpu.memory_space<vmem>>, vector<1x256x128xbf16>
    %25 = vector.shape_cast %24 : vector<1x256x128xbf16> to vector<256x128xbf16>
    %cst_18 = arith.constant dense<0.000000e+00> : vector<2x128xf32>
    %26 = tpu.matmul %23, %25, %cst_18 {dimension_numbers = #tpu.dot_dimension_numbers<[1], [0], [0], [1], [0, 0, 1, 1], [], []>} : vector<2x256xbf16>, vector<256x128xbf16>, vector<2x128xf32> -> vector<2x128xf32>
    %27 = arith.addf %22, %26 : vector<2x128xf32>
    %c4 = arith.constant 4 : index
    %c0_19 = arith.constant 0 : index
    %28 = vector.load %arg9[%c4, %c0_19] : memref<16x256xbf16, #tpu.memory_space<vmem>>, vector<2x256xbf16>
    %c2_20 = arith.constant 2 : index
    %c0_21 = arith.constant 0 : index
    %c0_22 = arith.constant 0 : index
    %29 = vector.load %arg8[%c2_20, %c0_21, %c0_22] : memref<8x256x128xbf16, #tpu.memory_space<vmem>>, vector<1x256x128xbf16>
    %30 = vector.shape_cast %29 : vector<1x256x128xbf16> to vector<256x128xbf16>
    %cst_23 = arith.constant dense<0.000000e+00> : vector<2x128xf32>
    %31 = tpu.matmul %28, %30, %cst_23 {dimension_numbers = #tpu.dot_dimension_numbers<[1], [0], [0], [1], [0, 0, 1, 1], [], []>} : vector<2x256xbf16>, vector<256x128xbf16>, vector<2x128xf32> -> vector<2x128xf32>
    %32 = arith.addf %27, %31 : vector<2x128xf32>
    %c6 = arith.constant 6 : index
    %c0_24 = arith.constant 0 : index
    %33 = vector.load %arg9[%c6, %c0_24] : memref<16x256xbf16, #tpu.memory_space<vmem>>, vector<2x256xbf16>
    %c3 = arith.constant 3 : index
    %c0_25 = arith.constant 0 : index
    %c0_26 = arith.constant 0 : index
    %34 = vector.load %arg8[%c3, %c0_25, %c0_26] : memref<8x256x128xbf16, #tpu.memory_space<vmem>>, vector<1x256x128xbf16>
    %35 = vector.shape_cast %34 : vector<1x256x128xbf16> to vector<256x128xbf16>
    %cst_27 = arith.constant dense<0.000000e+00> : vector<2x128xf32>
    %36 = tpu.matmul %33, %35, %cst_27 {dimension_numbers = #tpu.dot_dimension_numbers<[1], [0], [0], [1], [0, 0, 1, 1], [], []>} : vector<2x256xbf16>, vector<256x128xbf16>, vector<2x128xf32> -> vector<2x128xf32>
    %37 = arith.addf %32, %36 : vector<2x128xf32>
    %c8 = arith.constant 8 : index
    %c0_28 = arith.constant 0 : index
    %38 = vector.load %arg9[%c8, %c0_28] : memref<16x256xbf16, #tpu.memory_space<vmem>>, vector<2x256xbf16>
    %c4_29 = arith.constant 4 : index
    %c0_30 = arith.constant 0 : index
    %c0_31 = arith.constant 0 : index
    %39 = vector.load %arg8[%c4_29, %c0_30, %c0_31] : memref<8x256x128xbf16, #tpu.memory_space<vmem>>, vector<1x256x128xbf16>
    %40 = vector.shape_cast %39 : vector<1x256x128xbf16> to vector<256x128xbf16>
    %cst_32 = arith.constant dense<0.000000e+00> : vector<2x128xf32>
    %41 = tpu.matmul %38, %40, %cst_32 {dimension_numbers = #tpu.dot_dimension_numbers<[1], [0], [0], [1], [0, 0, 1, 1], [], []>} : vector<2x256xbf16>, vector<256x128xbf16>, vector<2x128xf32> -> vector<2x128xf32>
    %42 = arith.addf %37, %41 : vector<2x128xf32>
    %c10 = arith.constant 10 : index
    %c0_33 = arith.constant 0 : index
    %43 = vector.load %arg9[%c10, %c0_33] : memref<16x256xbf16, #tpu.memory_space<vmem>>, vector<2x256xbf16>
    %c5 = arith.constant 5 : index
    %c0_34 = arith.constant 0 : index
    %c0_35 = arith.constant 0 : index
    %44 = vector.load %arg8[%c5, %c0_34, %c0_35] : memref<8x256x128xbf16, #tpu.memory_space<vmem>>, vector<1x256x128xbf16>
    %45 = vector.shape_cast %44 : vector<1x256x128xbf16> to vector<256x128xbf16>
    %cst_36 = arith.constant dense<0.000000e+00> : vector<2x128xf32>
    %46 = tpu.matmul %43, %45, %cst_36 {dimension_numbers = #tpu.dot_dimension_numbers<[1], [0], [0], [1], [0, 0, 1, 1], [], []>} : vector<2x256xbf16>, vector<256x128xbf16>, vector<2x128xf32> -> vector<2x128xf32>
    %47 = arith.addf %42, %46 : vector<2x128xf32>
    %c12 = arith.constant 12 : index
    %c0_37 = arith.constant 0 : index
    %48 = vector.load %arg9[%c12, %c0_37] : memref<16x256xbf16, #tpu.memory_space<vmem>>, vector<2x256xbf16>
    %c6_38 = arith.constant 6 : index
    %c0_39 = arith.constant 0 : index
    %c0_40 = arith.constant 0 : index
    %49 = vector.load %arg8[%c6_38, %c0_39, %c0_40] : memref<8x256x128xbf16, #tpu.memory_space<vmem>>, vector<1x256x128xbf16>
    %50 = vector.shape_cast %49 : vector<1x256x128xbf16> to vector<256x128xbf16>
    %cst_41 = arith.constant dense<0.000000e+00> : vector<2x128xf32>
    %51 = tpu.matmul %48, %50, %cst_41 {dimension_numbers = #tpu.dot_dimension_numbers<[1], [0], [0], [1], [0, 0, 1, 1], [], []>} : vector<2x256xbf16>, vector<256x128xbf16>, vector<2x128xf32> -> vector<2x128xf32>
    %52 = arith.addf %47, %51 : vector<2x128xf32>
    %c14 = arith.constant 14 : index
    %c0_42 = arith.constant 0 : index
    %53 = vector.load %arg9[%c14, %c0_42] : memref<16x256xbf16, #tpu.memory_space<vmem>>, vector<2x256xbf16>
    %c7 = arith.constant 7 : index
    %c0_43 = arith.constant 0 : index
    %c0_44 = arith.constant 0 : index
    %54 = vector.load %arg8[%c7, %c0_43, %c0_44] : memref<8x256x128xbf16, #tpu.memory_space<vmem>>, vector<1x256x128xbf16>
    %55 = vector.shape_cast %54 : vector<1x256x128xbf16> to vector<256x128xbf16>
    %cst_45 = arith.constant dense<0.000000e+00> : vector<2x128xf32>
    %56 = tpu.matmul %53, %55, %cst_45 {dimension_numbers = #tpu.dot_dimension_numbers<[1], [0], [0], [1], [0, 0, 1, 1], [], []>} : vector<2x256xbf16>, vector<256x128xbf16>, vector<2x128xf32> -> vector<2x128xf32>
    %57 = arith.addf %52, %56 : vector<2x128xf32>
    %c0_46 = arith.constant 0 : index
    %c0_47 = arith.constant 0 : index
    %58 = vector.load %arg4[%c0_46, %c0_47] : memref<1x128xf32, #tpu.memory_space<vmem>>, vector<1x128xf32>
    %59 = vector.broadcast %58 : vector<1x128xf32> to vector<2x128xf32>
    %60 = arith.addf %57, %59 : vector<2x128xf32>
    %cst_48 = arith.constant 0.000000e+00 : f32
    %61 = vector.broadcast %cst_48 : f32 to vector<2x128xf32>
    %62 = arith.maximumf %60, %61 : vector<2x128xf32>
    %c0_49 = arith.constant 0 : index
    %c0_50 = arith.constant 0 : index
    %63 = vector.load %arg5[%c0_49, %c0_50] : memref<128x3xf32, #tpu.memory_space<vmem>>, vector<128x3xf32>
    %cst_51 = arith.constant dense<0.000000e+00> : vector<2x3xf32>
    %64 = tpu.matmul %62, %63, %cst_51 {dimension_numbers = #tpu.dot_dimension_numbers<[1], [0], [0], [1], [0, 0, 1, 1], [], []>} : vector<2x128xf32>, vector<128x3xf32>, vector<2x3xf32> -> vector<2x3xf32>
    %c0_52 = arith.constant 0 : index
    %c0_53 = arith.constant 0 : index
    %65 = vector.load %arg6[%c0_52, %c0_53] : memref<1x3xf32, #tpu.memory_space<vmem>>, vector<1x3xf32>
    %66 = vector.broadcast %65 : vector<1x3xf32> to vector<2x3xf32>
    %67 = arith.addf %64, %66 : vector<2x3xf32>
    %c0_54 = arith.constant 0 : index
    %c0_55 = arith.constant 0 : index
    %68 = vector.load %arg7[%c0_54, %c0_55] : memref<2x3xf32, #tpu.memory_space<vmem>>, vector<2x3xf32>
    tpu.vector_store %arg7[%c0_54, %c0_55], %67 {strides = array<i32>} : memref<2x3xf32, #tpu.memory_space<vmem>>, vector<2x3xf32>,
    return
  }
}

</mosaic_0001>

<bundles_post_ra>
// kernel: cnn1_forward.1
= control target key start
LH: loop header
LB: loop body
LE: loop exit
PB: predicated region body
PF: predicated region fallthrough
CT: control target
= control target key end

     0   :  { %12 = vsyncpa [#allocation6], 0  ;;  %s2462_s0 = inlined_call_operand.vmem [shape: bf16[96,256], index: 0, kind: input, shape index: {}]   ;;  %s2463_s1 = inlined_call_operand.vmem [shape: bf16[64,96], index: 1, kind: input, shape index: {}]   ;;  %s2464_s2 = inlined_call_operand.vmem [shape: f32[16,1], index: 2, kind: input, shape index: {}]   ;;  %s2465_s3 = inlined_call_operand.vmem [shape: bf16[8,256,128], index: 3, kind: input, shape index: {}]   ;;  %s2466_s4 = inlined_call_operand.vmem [shape: f32[1,128], index: 4, kind: input, shape index: {}]   ;;  %s2467_s5 = inlined_call_operand.vmem [shape: f32[128,3], index: 5, kind: input, shape index: {}]   ;;  %s2468_s6 = inlined_call_operand.vmem [shape: f32[1,3], index: 6, kind: input, shape index: {}]   ;;  %s2469_s7 = inlined_call_operand.hbm [shape: f32[2,3], index: 7, kind: output, shape index: {}]  }
   0x1   :  { %v1577_v0 = vld [vmem:[%s2465_s3] sm:$0xff]  ;;  %v1582_v1 = vld [vmem:[%s2465_s3 + $0x8] sm:$0xff]  ;;  %v1587_v2 = vld [vmem:[%s2465_s3 + $0x10] sm:$0xff] }
   0x2   :  { %v1592_v3 = vld [vmem:[%s2465_s3 + $0x18] sm:$0xff]  ;;  %v1597_v4 = vld [vmem:[%s2465_s3 + $0x20] sm:$0xff]  ;;  %v1602_v5 = vld [vmem:[%s2465_s3 + $0x28] sm:$0xff] }
   0x3   :  { %v1607_v6 = vld [vmem:[%s2465_s3 + $0x30] sm:$0xff]  ;;  %v1612_v7 = vld [vmem:[%s2465_s3 + $0x38] sm:$0xff]  ;;  %v1617_v8 = vld [vmem:[%s2465_s3 + $0x40] sm:$0xff] }
   0x4   :  { %v1622_v9 = vld [vmem:[%s2465_s3 + $0x48] sm:$0xff]  ;;  %v1627_v10 = vld [vmem:[%s2465_s3 + $0x50] sm:$0xff]  ;;  %v1632_v11 = vld [vmem:[%s2465_s3 + $0x58] sm:$0xff] }
   0x5   :  { %v1637_v12 = vld [vmem:[%s2465_s3 + $0x60] sm:$0xff]  ;;  %v1642_v13 = vld [vmem:[%s2465_s3 + $0x68] sm:$0xff]  ;;  %v1647_v14 = vld [vmem:[%s2465_s3 + $0x70] sm:$0xff] }
   0x6   :  { %v1652_v15 = vld [vmem:[%s2465_s3 + $0x78] sm:$0xff]  ;;  %v1657_v16 = vld [vmem:[%s2465_s3 + $0x80] sm:$0xff]  ;;  %v1662_v17 = vld [vmem:[%s2465_s3 + $0x88] sm:$0xff] }
   0x7   :  { %v1667_v18 = vld [vmem:[%s2465_s3 + $0x90] sm:$0xff]  ;;  %v1672_v19 = vld [vmem:[%s2465_s3 + $0x98] sm:$0xff]  ;;  %v1677_v20 = vld [vmem:[%s2465_s3 + $0xa0] sm:$0xff] }
   0x8   :  { %v1682_v21 = vld [vmem:[%s2465_s3 + $0xa8] sm:$0xff]  ;;  %v1687_v22 = vld [vmem:[%s2465_s3 + $0xb0] sm:$0xff]  ;;  %v1692_v23 = vld [vmem:[%s2465_s3 + $0xb8] sm:$0xff] }
   0x9   :  { %v1697_v24 = vld [vmem:[%s2465_s3 + $0xc0] sm:$0xff]  ;;  %v1702_v25 = vld [vmem:[%s2465_s3 + $0xc8] sm:$0xff]  ;;  %v1707_v26 = vld [vmem:[%s2465_s3 + $0xd0] sm:$0xff] }
   0xa   :  { %v1712_v27 = vld [vmem:[%s2465_s3 + $0xd8] sm:$0xff]  ;;  %v1717_v28 = vld [vmem:[%s2465_s3 + $0xe0] sm:$0xff]  ;;  %v1722_v29 = vld [vmem:[%s2465_s3 + $0xe8] sm:$0xff] }
   0xb   :  { %v1727_v30 = vld [vmem:[%s2465_s3 + $0xf0] sm:$0xff]  ;;  %v1732_v31 = vld [vmem:[%s2465_s3 + $0xf8] sm:$0xff]  ;;  %v1737_v32 = vld [vmem:[%s2465_s3 + $0x100] sm:$0xff] }
   0xc   :  { %2470 = vst [vmem:[#allocation10_spill] sm:$0xff] %v1737_v32  ;;  %v1742_v33 = vld [vmem:[%s2465_s3 + $0x108] sm:$0xff]  ;;  %v1747_v34 = vld [vmem:[%s2465_s3 + $0x110] sm:$0xff]  ;;  %v1752_v35 = vld [vmem:[%s2465_s3 + $0x118] sm:$0xff] }
   0xd   :  { %2471 = vst [vmem:[#allocation11_spill] sm:$0xff] %v1742_v33  ;;  %2472 = vst [vmem:[#allocation12_spill] sm:$0xff] %v1747_v34  ;;  %v1757_v36 = vld [vmem:[%s2465_s3 + $0x120] sm:$0xff]  ;;  %v1762_v37 = vld [vmem:[%s2465_s3 + $0x128] sm:$0xff] }
   0xe   :  { %2473 = vst [vmem:[#allocation13_spill] sm:$0xff] %v1752_v35  ;;  %2474 = vst [vmem:[#allocation14_spill] sm:$0xff] %v1757_v36  ;;  %v1767_v38 = vld [vmem:[%s2465_s3 + $0x130] sm:$0xff]  ;;  %v1772_v39 = vld [vmem:[%s2465_s3 + $0x138] sm:$0xff] }
   0xf   :  { %2475 = vst [vmem:[#allocation15_spill] sm:$0xff] %v1762_v37  ;;  %2476 = vst [vmem:[#allocation16_spill] sm:$0xff] %v1767_v38  ;;  %v1777_v40 = vld [vmem:[%s2465_s3 + $0x140] sm:$0xff]  ;;  %v1782_v41 = vld [vmem:[%s2465_s3 + $0x148] sm:$0xff] }
  0x10   :  { %2477 = vst [vmem:[#allocation17_spill] sm:$0xff] %v1772_v39  ;;  %2478 = vst [vmem:[#allocation18_spill] sm:$0xff] %v1782_v41  ;;  %v1787_v42 = vld [vmem:[%s2465_s3 + $0x150] sm:$0xff]  ;;  %v1792_v43 = vld [vmem:[%s2465_s3 + $0x158] sm:$0xff] }
  0x11   :  { %2479 = vst [vmem:[#allocation19_spill] sm:$0xff] %v1787_v42  ;;  %2480 = vst [vmem:[#allocation20_spill] sm:$0xff] %v1792_v43  ;;  %v1797_v44 = vld [vmem:[%s2465_s3 + $0x160] sm:$0xff]  ;;  %v1802_v45 = vld [vmem:[%s2465_s3 + $0x168] sm:$0xff] }
  0x12   :  { %2481 = vst [vmem:[#allocation21_spill] sm:$0xff] %v1797_v44  ;;  %2482 = vst [vmem:[#allocation22_spill] sm:$0xff] %v1802_v45  ;;  %v1807_v46 = vld [vmem:[%s2465_s3 + $0x170] sm:$0xff]  ;;  %v1812_v47 = vld [vmem:[%s2465_s3 + $0x178] sm:$0xff] }
  0x13   :  { %2483 = vst [vmem:[#allocation23_spill] sm:$0xff] %v1807_v46  ;;  %2484 = vst [vmem:[#allocation24_spill] sm:$0xff] %v1812_v47  ;;  %v1817_v48 = vld [vmem:[%s2465_s3 + $0x180] sm:$0xff]  ;;  %v1822_v49 = vld [vmem:[%s2465_s3 + $0x188] sm:$0xff] }
  0x14   :  { %2485 = vst [vmem:[#allocation25_spill] sm:$0xff] %v1817_v48  ;;  %2486 = vst [vmem:[#allocation26_spill] sm:$0xff] %v1822_v49  ;;  %v1827_v50 = vld [vmem:[%s2465_s3 + $0x190] sm:$0xff]  ;;  %v1832_v51 = vld [vmem:[%s2465_s3 + $0x198] sm:$0xff] }
  0x15   :  { %2487 = vst [vmem:[#allocation27_spill] sm:$0xff] %v1827_v50  ;;  %2488 = vst [vmem:[#allocation28_spill] sm:$0xff] %v1832_v51  ;;  %v1837_v52 = vld [vmem:[%s2465_s3 + $0x1a0] sm:$0xff]  ;;  %v1842_v53 = vld [vmem:[%s2465_s3 + $0x1a8] sm:$0xff] }
  0x16   :  { %2489 = vst [vmem:[#allocation29_spill] sm:$0xff] %v1837_v52  ;;  %2490 = vst [vmem:[#allocation30_spill] sm:$0xff] %v1842_v53  ;;  %v1847_v54 = vld [vmem:[%s2465_s3 + $0x1b0] sm:$0xff]  ;;  %v1852_v55 = vld [vmem:[%s2465_s3 + $0x1b8] sm:$0xff] }
  0x17   :  { %2491 = vst [vmem:[#allocation31_spill] sm:$0xff] %v1847_v54  ;;  %2492 = vst [vmem:[#allocation32_spill] sm:$0xff] %v1852_v55  ;;  %v1857_v56 = vld [vmem:[%s2465_s3 + $0x1c0] sm:$0xff]  ;;  %v1862_v57 = vld [vmem:[%s2465_s3 + $0x1c8] sm:$0xff] }
  0x18   :  { %2493 = vst [vmem:[#allocation33_spill] sm:$0xff] %v1862_v57  ;;  %v1867_v58 = vld [vmem:[%s2465_s3 + $0x1d0] sm:$0xff]  ;;  %v1872_v59 = vld [vmem:[%s2465_s3 + $0x1d8] sm:$0xff]  ;;  %v1877_v60 = vld [vmem:[%s2465_s3 + $0x1e0] sm:$0xff] }
  0x19   :  { %2494 = vst [vmem:[#allocation34_spill] sm:$0xff] %v1867_v58  ;;  %2495 = vst [vmem:[#allocation35_spill] sm:$0xff] %v1872_v59  ;;  %v1882_v61 = vld [vmem:[%s2465_s3 + $0x1e8] sm:$0xff]  ;;  %v1887_v62 = vld [vmem:[%s2465_s3 + $0x1f0] sm:$0xff] }
  0x1a   :  { %2496 = vst [vmem:[#allocation36_spill] sm:$0xff] %v1877_v60  ;;  %2497 = vst [vmem:[#allocation37_spill] sm:$0xff] %v1882_v61  ;;  %v1892_v63 = vld [vmem:[%s2465_s3 + $0x1f8] sm:$0xff]  ;;  %v1897_v55 = vld [vmem:[%s2465_s3 + $0x200] sm:$0xff] }
  0x1b   :  { %2498 = vst [vmem:[#allocation38_spill] sm:$0xff] %v1887_v62  ;;  %2499 = vst [vmem:[#allocation39_spill] sm:$0xff] %v1892_v63  ;;  %v1902_v39 = vld [vmem:[%s2465_s3 + $0x208] sm:$0xff]  ;;  %v1907_v47 = vld [vmem:[%s2465_s3 + $0x210] sm:$0xff] }
  0x1c   :  { %2500 = vst [vmem:[#allocation40_spill] sm:$0xff] %v1897_v55  ;;  %2501 = vst [vmem:[#allocation41_spill] sm:$0xff] %v1902_v39  ;;  %v1912_v54 = vld [vmem:[%s2465_s3 + $0x218] sm:$0xff]  ;;  %v1917_v63 = vld [vmem:[%s2465_s3 + $0x220] sm:$0xff] }
  0x1d   :  { %2502 = vst [vmem:[#allocation42_spill] sm:$0xff] %v1907_v47  ;;  %2503 = vst [vmem:[#allocation43_spill] sm:$0xff] %v1912_v54  ;;  %v1922_v55 = vld [vmem:[%s2465_s3 + $0x228] sm:$0xff]  ;;  %v1927_v39 = vld [vmem:[%s2465_s3 + $0x230] sm:$0xff] }
  0x1e   :  { %2504 = vst [vmem:[#allocation44_spill] sm:$0xff] %v1917_v63  ;;  %2505 = vst [vmem:[#allocation45_spill] sm:$0xff] %v1922_v55  ;;  %v1932_v47 = vld [vmem:[%s2465_s3 + $0x238] sm:$0xff]  ;;  %v1937_v54 = vld [vmem:[%s2465_s3 + $0x240] sm:$0xff] }
  0x1f   :  { %2506 = vst [vmem:[#allocation46_spill] sm:$0xff] %v1927_v39  ;;  %2507 = vst [vmem:[#allocation47_spill] sm:$0xff] %v1932_v47  ;;  %v1942_v63 = vld [vmem:[%s2465_s3 + $0x248] sm:$0xff]  ;;  %v1947_v55 = vld [vmem:[%s2465_s3 + $0x250] sm:$0xff] }
  0x20   :  { %2508 = vst [vmem:[#allocation48_spill] sm:$0xff] %v1937_v54  ;;  %2509 = vst [vmem:[#allocation49_spill] sm:$0xff] %v1942_v63  ;;  %v1952_v39 = vld [vmem:[%s2465_s3 + $0x258] sm:$0xff]  ;;  %v1957_v47 = vld [vmem:[%s2465_s3 + $0x260] sm:$0xff] }
  0x21   :  { %2510 = vst [vmem:[#allocation50_spill] sm:$0xff] %v1947_v55  ;;  %2511 = vst [vmem:[#allocation51_spill] sm:$0xff] %v1952_v39  ;;  %v1962_v54 = vld [vmem:[%s2465_s3 + $0x268] sm:$0xff]  ;;  %v1967_v63 = vld [vmem:[%s2465_s3 + $0x270] sm:$0xff] }
  0x22   :  { %2512 = vst [vmem:[#allocation52_spill] sm:$0xff] %v1957_v47  ;;  %2513 = vst [vmem:[#allocation53_spill] sm:$0xff] %v1962_v54  ;;  %v1972_v55 = vld [vmem:[%s2465_s3 + $0x278] sm:$0xff]  ;;  %v1977_v39 = vld [vmem:[%s2465_s3 + $0x280] sm:$0xff] }
  0x23   :  { %2514 = vst [vmem:[#allocation54_spill] sm:$0xff] %v1967_v63  ;;  %2515 = vst [vmem:[#allocation55_spill] sm:$0xff] %v1972_v55  ;;  %v1982_v47 = vld [vmem:[%s2465_s3 + $0x288] sm:$0xff]  ;;  %v1987_v54 = vld [vmem:[%s2465_s3 + $0x290] sm:$0xff] }
  0x24   :  { %2516 = vst [vmem:[#allocation56_spill] sm:$0xff] %v1977_v39  ;;  %2517 = vst [vmem:[#allocation57_spill] sm:$0xff] %v1982_v47  ;;  %v1992_v63 = vld [vmem:[%s2465_s3 + $0x298] sm:$0xff]  ;;  %v1997_v55 = vld [vmem:[%s2465_s3 + $0x2a0] sm:$0xff] }
  0x25   :  { %2518 = vst [vmem:[#allocation58_spill] sm:$0xff] %v1987_v54  ;;  %2519 = vst [vmem:[#allocation59_spill] sm:$0xff] %v1992_v63  ;;  %v2002_v39 = vld [vmem:[%s2465_s3 + $0x2a8] sm:$0xff]  ;;  %v2007_v47 = vld [vmem:[%s2465_s3 + $0x2b0] sm:$0xff] }
  0x26   :  { %2520 = vst [vmem:[#allocation60_spill] sm:$0xff] %v1997_v55  ;;  %2521 = vst [vmem:[#allocation61_spill] sm:$0xff] %v2002_v39  ;;  %v2012_v54 = vld [vmem:[%s2465_s3 + $0x2b8] sm:$0xff]  ;;  %v2017_v63 = vld [vmem:[%s2465_s3 + $0x2c0] sm:$0xff] }
  0x27   :  { %2522 = vst [vmem:[#allocation62_spill] sm:$0xff] %v2007_v47  ;;  %2523 = vst [vmem:[#allocation63_spill] sm:$0xff] %v2012_v54  ;;  %v2022_v55 = vld [vmem:[%s2465_s3 + $0x2c8] sm:$0xff]  ;;  %v2027_v39 = vld [vmem:[%s2465_s3 + $0x2d0] sm:$0xff] }
  0x28   :  { %2524 = vst [vmem:[#allocation64_spill] sm:$0xff] %v2017_v63  ;;  %2525 = vst [vmem:[#allocation65_spill] sm:$0xff] %v2022_v55  ;;  %v2032_v47 = vld [vmem:[%s2465_s3 + $0x2d8] sm:$0xff]  ;;  %v2037_v54 = vld [vmem:[%s2465_s3 + $0x2e0] sm:$0xff] }
  0x29   :  { %2526 = vst [vmem:[#allocation66_spill] sm:$0xff] %v2027_v39  ;;  %2527 = vst [vmem:[#allocation67_spill] sm:$0xff] %v2032_v47  ;;  %v2042_v63 = vld [vmem:[%s2465_s3 + $0x2e8] sm:$0xff]  ;;  %v2047_v55 = vld [vmem:[%s2465_s3 + $0x2f0] sm:$0xff] }
  0x2a   :  { %2528 = vst [vmem:[#allocation68_spill] sm:$0xff] %v2037_v54  ;;  %2529 = vst [vmem:[#allocation69_spill] sm:$0xff] %v2042_v63  ;;  %v2052_v39 = vld [vmem:[%s2465_s3 + $0x2f8] sm:$0xff]  ;;  %v2057_v47 = vld [vmem:[%s2465_s3 + $0x300] sm:$0xff] }
  0x2b   :  { %2530 = vst [vmem:[#allocation70_spill] sm:$0xff] %v2047_v55  ;;  %2531 = vst [vmem:[#allocation71_spill] sm:$0xff] %v2052_v39  ;;  %v2062_v54 = vld [vmem:[%s2465_s3 + $0x308] sm:$0xff]  ;;  %v2067_v63 = vld [vmem:[%s2465_s3 + $0x310] sm:$0xff] }
  0x2c   :  { %2532 = vst [vmem:[#allocation72_spill] sm:$0xff] %v2057_v47  ;;  %2533 = vst [vmem:[#allocation73_spill] sm:$0xff] %v2062_v54  ;;  %v2072_v55 = vld [vmem:[%s2465_s3 + $0x318] sm:$0xff]  ;;  %v2077_v39 = vld [vmem:[%s2465_s3 + $0x320] sm:$0xff] }
  0x2d   :  { %2534 = vst [vmem:[#allocation74_spill] sm:$0xff] %v2067_v63  ;;  %2535 = vst [vmem:[#allocation75_spill] sm:$0xff] %v2072_v55  ;;  %v2082_v47 = vld [vmem:[%s2465_s3 + $0x328] sm:$0xff]  ;;  %v2087_v54 = vld [vmem:[%s2465_s3 + $0x330] sm:$0xff] }
  0x2e   :  { %2536 = vst [vmem:[#allocation76_spill] sm:$0xff] %v2077_v39  ;;  %2537 = vst [vmem:[#allocation77_spill] sm:$0xff] %v2082_v47  ;;  %v2092_v63 = vld [vmem:[%s2465_s3 + $0x338] sm:$0xff]  ;;  %v2097_v55 = vld [vmem:[%s2465_s3 + $0x340] sm:$0xff] }
  0x2f   :  { %2538 = vst [vmem:[#allocation78_spill] sm:$0xff] %v2087_v54  ;;  %2539 = vst [vmem:[#allocation79_spill] sm:$0xff] %v2092_v63  ;;  %v2102_v39 = vld [vmem:[%s2465_s3 + $0x348] sm:$0xff]  ;;  %v2107_v47 = vld [vmem:[%s2465_s3 + $0x350] sm:$0xff] }
  0x30   :  { %2540 = vst [vmem:[#allocation80_spill] sm:$0xff] %v2097_v55  ;;  %2541 = vst [vmem:[#allocation81_spill] sm:$0xff] %v2102_v39  ;;  %v2112_v54 = vld [vmem:[%s2465_s3 + $0x358] sm:$0xff]  ;;  %v2117_v63 = vld [vmem:[%s2465_s3 + $0x360] sm:$0xff] }
  0x31   :  { %2542 = vst [vmem:[#allocation82_spill] sm:$0xff] %v2107_v47  ;;  %2543 = vst [vmem:[#allocation83_spill] sm:$0xff] %v2112_v54  ;;  %v2122_v55 = vld [vmem:[%s2465_s3 + $0x368] sm:$0xff]  ;;  %v2127_v39 = vld [vmem:[%s2465_s3 + $0x370] sm:$0xff] }
  0x32   :  { %2544 = vst [vmem:[#allocation84_spill] sm:$0xff] %v2117_v63  ;;  %2545 = vst [vmem:[#allocation85_spill] sm:$0xff] %v2122_v55  ;;  %v2132_v47 = vld [vmem:[%s2465_s3 + $0x378] sm:$0xff]  ;;  %v2137_v54 = vld [vmem:[%s2465_s3 + $0x380] sm:$0xff] }
  0x33   :  { %2546 = vst [vmem:[#allocation86_spill] sm:$0xff] %v2127_v39  ;;  %2547 = vst [vmem:[#allocation87_spill] sm:$0xff] %v2132_v47  ;;  %v2142_v63 = vld [vmem:[%s2465_s3 + $0x388] sm:$0xff]  ;;  %v2147_v55 = vld [vmem:[%s2465_s3 + $0x390] sm:$0xff] }
  0x34   :  { %2548 = vst [vmem:[#allocation88_spill] sm:$0xff] %v2137_v54  ;;  %2549 = vst [vmem:[#allocation89_spill] sm:$0xff] %v2142_v63  ;;  %v2152_v39 = vld [vmem:[%s2465_s3 + $0x398] sm:$0xff]  ;;  %v2157_v47 = vld [vmem:[%s2465_s3 + $0x3a0] sm:$0xff] }
  0x35   :  { %2550 = vst [vmem:[#allocation90_spill] sm:$0xff] %v2147_v55  ;;  %2551 = vst [vmem:[#allocation91_spill] sm:$0xff] %v2152_v39  ;;  %v2162_v54 = vld [vmem:[%s2465_s3 + $0x3a8] sm:$0xff]  ;;  %v2167_v63 = vld [vmem:[%s2465_s3 + $0x3b0] sm:$0xff] }
  0x36   :  { %2552 = vst [vmem:[#allocation92_spill] sm:$0xff] %v2157_v47  ;;  %2553 = vst [vmem:[#allocation93_spill] sm:$0xff] %v2162_v54  ;;  %v2172_v55 = vld [vmem:[%s2465_s3 + $0x3b8] sm:$0xff]  ;;  %v2177_v39 = vld [vmem:[%s2465_s3 + $0x3c0] sm:$0xff] }
  0x37   :  { %2554 = vst [vmem:[#allocation94_spill] sm:$0xff] %v2167_v63  ;;  %2555 = vst [vmem:[#allocation95_spill] sm:$0xff] %v2172_v55  ;;  %v2182_v47 = vld [vmem:[%s2465_s3 + $0x3c8] sm:$0xff]  ;;  %v2187_v54 = vld [vmem:[%s2465_s3 + $0x3d0] sm:$0xff] }
  0x38   :  { %2556 = vst [vmem:[#allocation96_spill] sm:$0xff] %v2177_v39  ;;  %2557 = vst [vmem:[#allocation97_spill] sm:$0xff] %v2182_v47  ;;  %v2192_v63 = vld [vmem:[%s2465_s3 + $0x3d8] sm:$0xff]  ;;  %v2197_v55 = vld [vmem:[%s2465_s3 + $0x3e0] sm:$0xff] }
  0x39   :  { %2558 = vst [vmem:[#allocation98_spill] sm:$0xff] %v2187_v54  ;;  %2559 = vst [vmem:[#allocation99_spill] sm:$0xff] %v2192_v63  ;;  %v2202_v39 = vld [vmem:[%s2465_s3 + $0x3e8] sm:$0xff]  ;;  %v2207_v47 = vld [vmem:[%s2465_s3 + $0x3f0] sm:$0xff] }
  0x3a   :  { %2560 = vst [vmem:[#allocation100_spill] sm:$0xff] %v2197_v55  ;;  %2561 = vst [vmem:[#allocation101_spill] sm:$0xff] %v2202_v39  ;;  %v2212_v54 = vld [vmem:[%s2465_s3 + $0x3f8] sm:$0xff] }
  0x3b   :  { %2562 = vst [vmem:[#allocation102_spill] sm:$0xff] %v2207_v47  ;;  %2563 = vst [vmem:[#allocation103_spill] sm:$0xff] %v2212_v54 }
  0x3c   :  { %321 = vsyncadd [#allocation4], 16384  ;;  %v1481_v55 = vld [vmem:[%s2462_s0 + $0x4] ss:$8 sps:$4 sm:$0xff]   ;;  %v1483_v63 = vld [vmem:[%s2462_s0] ss:$8 sps:$4 sm:$0xff]   ;;  %1223 = vmatprep.subr.bf16.mxu1 %v1697_v24 }
  0x3d   :  { %v1529_v39 = vmov 0   ;;  %v1484_v47 = vld [vmem:[%s2462_s0 + $0x14] ss:$8 sps:$4 sm:$0xff]   ;;  %435 = vmatprep.subr.bf16.mxu0 %v1481_v55  ;;  %v1486_v54 = vld [vmem:[%s2462_s0 + $0x10] ss:$8 sps:$4 sm:$0xff]   ;;  %vm422_vm0 = vcmask 785408  }
  0x3e   :  { %467 = vmatprep.mubr.bf16.mxu0 %v1529_v39  ;;  %1480 = vset.pattern.permute.xlu0 %v1529_v39  ;;  %v1487_v38 = vld [vmem:[%s2462_s0 + $0x24] ss:$8 sps:$4 sm:$0xff]   ;;  %v1489_v62 = vld [vmem:[%s2462_s0 + $0x20] ss:$8 sps:$4 sm:$0xff]   ;;  %v1490_v55 = vld [vmem:[%s2462_s0 + $0x34] ss:$8 sps:$4 sm:$0xff]  }
  0x3f   :  { %436 = vmatpush1.bf16.msra.mxu0 %v1483_v63  ;;  %v1492_v63 = vld [vmem:[%s2462_s0 + $0x30] ss:$8 sps:$4 sm:$0xff]   ;;  %v1496_v46 = vld [vmem:[%s2462_s0 + $0x54] ss:$8 sps:$4 sm:$0xff]  }
  0x40   :  { %437 = vmatprep.subr.bf16.mxu0 %v1484_v47  ;;  %v520_v47 = vld [vmem:[%s2464_s2] sm:$0xff] }
  0x41   :  { %524 = vperm.xlu0 %1480, %v520_v47   ;;  %v1500_v47 = vld [vmem:[%s2463_s1 + $0x8] sm:$0xff]  }
  0x43   :  { %438 = vmatpush1.bf16.msra.mxu0 %v1486_v54  ;;  %v1493_v54 = vld [vmem:[%s2462_s0 + $0x44] ss:$8 sps:$4 sm:$0xff]  }
  0x44   :  { %439 = vmatprep.subr.bf16.mxu0 %v1487_v38  ;;  %v521_v38 = vld [vmem:[%s2464_s2 + $0x8] sm:$0xff] }
  0x45   :  { %529 = vperm.xlu0 %1480, %v521_v38  }
  0x47   :  { %440 = vmatpush1.bf16.msra.mxu0 %v1489_v62  ;;  %v1495_v62 = vld [vmem:[%s2462_s0 + $0x40] ss:$8 sps:$4 sm:$0xff]  }
  0x48   :  { %441 = vmatprep.subr.bf16.mxu0 %v1490_v55  ;;  %v1498_v55 = vld [vmem:[%s2462_s0 + $0x50] ss:$8 sps:$4 sm:$0xff]  }
  0x4b   :  { %442 = vmatpush1.bf16.msra.mxu0 %v1492_v63  ;;  %v1499_v63 = vld [vmem:[%s2463_s1] sm:$0xff]  }
  0x4c   :  { %443 = vmatprep.subr.bf16.mxu0 %v1493_v54  ;;  %v1501_v54 = vld [vmem:[%s2463_s1 + $0x10] sm:$0xff]  }
  0x4f   :  { %444 = vmatpush1.bf16.msra.mxu0 %v1495_v62 }
  0x50   :  { %445 = vmatprep.subr.bf16.mxu0 %v1496_v46  ;;  %v1502_v46 = vld [vmem:[%s2463_s1 + $0x18] sm:$0xff]  }
  0x53   :  { %446 = vmatpush1.bf16.msra.mxu0 %v1498_v55 }
  0x54   :  { %1245 = vmatprep.subr.bf16.mxu0 %v1617_v8 }
  0x56   :  { %1216 = vmatmul.mubr.msk.bf16.vlgmr.msra.gmra.mrb[0].mxu0 %vm422_vm0, %v1499_v63 }
  0x57   :  { %477 = vmatprep.mubr.bf16.mxu0 %v1529_v39 }
  0x5e   :  { %1217 = vmatmul.mubr.msk.bf16.gmra.mrb[4].mxu0 %vm422_vm0, %v1500_v47 }
  0x5f   :  { %487 = vmatprep.mubr.bf16.mxu0 %v1529_v39 }
  0x66   :  { %1218 = vmatmul.mubr.msk.bf16.gmra.mrb[8].mxu0 %vm422_vm0, %v1501_v54 }
  0x67   :  { %497 = vmatprep.mubr.bf16.mxu0 %v1529_v39 }
  0x6e   :  { %1219 = vmatmul.mubr.msk.bf16.gmra.mrb[12].mxu0 %vm422_vm0, %v1502_v46 }
  0xc0   :  { %v525_v35 = vpop.permute.xlu0 %524 }
 0x129   :  { %v469_v38 = vpop.f32.mrb[0].mxu0 }
 0x12a   :  { %v471_v62 = vpop.f32.mrb[1].mxu0 }
 0x12b   :  { %v473_v55 = vpop.f32.mrb[2].mxu0 }
 0x12c   :  { %v475_v63 = vpop.f32.mrb[3].mxu0 }
 0x131   :  { %v479_v53 = vpop.f32.mrb[4].mxu0 }
 0x132   :  { %v508_v37 = vmax.f32 %v469_v38, %v479_v53  ;;  %v481_v61 = vpop.f32.mrb[5].mxu0 }
 0x133   :  { %v509_v47 = vmax.f32 %v471_v62, %v481_v61  ;;  %v483_v45 = vpop.f32.mrb[6].mxu0 }
 0x134   :  { %v510_v52 = vmax.f32 %v473_v55, %v483_v45  ;;  %v485_v36 = vpop.f32.mrb[7].mxu0  ;;  %v530_v55 = vpop.permute.xlu0 %529 }
 0x135   :  { %v511_v60 = vmax.f32 %v475_v63, %v485_v36 }
 0x139   :  { %v489_v44 = vpop.f32.mrb[8].mxu0 }
 0x13a   :  { %v491_v54 = vpop.f32.mrb[9].mxu0 }
 0x13b   :  { %v493_v39 = vpop.f32.mrb[10].mxu0 }
 0x13c   :  { %v495_v51 = vpop.f32.mrb[11].mxu0 }
 0x141   :  { %v499_v59 = vpop.f32.mrb[12].mxu0 }
 0x142   :  { %v512_v43 = vmax.f32 %v489_v44, %v499_v59  ;;  %v501_v46 = vpop.f32.mrb[13].mxu0 }
 0x143   :  { %v513_v50 = vmax.f32 %v491_v54, %v501_v46  ;;  %v503_v34 = vpop.f32.mrb[14].mxu0 }
 0x144   :  { %v516_v58 = vmax.f32 %v508_v37, %v512_v43  ;;  %v514_v42 = vmax.f32 %v493_v39, %v503_v34  ;;  %v505_v49 = vpop.f32.mrb[15].mxu0 }
 0x145   :  { %v517_v53 = vmax.f32 %v509_v47, %v513_v50  ;;  %v515_v38 = vmax.f32 %v495_v51, %v505_v49 }
 0x146   :  { %v532_v61 = vadd.f32 %v525_v35, %v516_v58  ;;  %v518_v62 = vmax.f32 %v510_v52, %v514_v42 }
 0x147   :  { %v533_v45 = vadd.f32 %v525_v35, %v517_v53  ;;  %v519_v36 = vmax.f32 %v511_v60, %v515_v38 }
 0x148   :  { %v534_v63 = vadd.f32 %v530_v55, %v518_v62  ;;  %v536_v57 = vmax.f32 %v532_v61, 0.0 }
 0x149   :  { %v535_v33 = vadd.f32 %v530_v55, %v519_v36  ;;  %v537_v48 = vmax.f32 %v533_v45, 0.0 }
 0x14a   :  { %v538_v41 = vmax.f32 %v534_v63, 0.0 }
 0x14b   :  { %v539_v32 = vmax.f32 %v535_v33, 0.0 }
 0x14c   :  { %v540_v44 = vpack.c.bf16 %v538_v41, %v536_v57 }
 0x14d   :  { %v541_v59 = vpack.c.bf16 %v539_v32, %v537_v48 }
 0x14e   :  { %542 = vst [vmem:[#allocation3] sm:$0xff] %v540_v44 }
 0x14f   :  { %543 = vst [vmem:[#allocation3 + $0x8] sm:$0xff] %v541_v59 }
 0x150   :  { %1525 = dma.done.wait [#allocation4], 16384 }
 0x151   :  { %1526 = vsyncadd [#allocation4], 4294950912  ;;  %1224 = vmatpush3.bf16.msra.mxu1 %v1657_v16  ;;  %1246 = vmatpush3.bf16.msra.mxu0 %v1577_v0  ;;  %v2572_v16 = vld [vmem:[#allocation12_spill] sm:$0xff]  ;;  %v2587_v33 = vld [vmem:[#allocation38_spill] sm:$0xff]  ;;  %vm1531_vm1 = vmmov 0   ;;  %s1533_s20 = smov [#allocation5]  }
 0x152   :  { %1225 = vmatprep.subr.bf16.mxu1 %v1702_v25  ;;  %1247 = vmatprep.subr.bf16.mxu0 %v1622_v9  ;;  %v2580_v25 = vld [vmem:[#allocation14_spill] sm:$0xff]  ;;  %v2588_v34 = vld [vmem:[#allocation16_spill] sm:$0xff]  ;;  %v2589_v35 = vld [vmem:[#allocation31_spill] sm:$0xff]  ;;  %s1178_s21 = sshll.u32 %s1533_s20, 4  ;;  %vm1170_vm2 = vcmask 17408   ;;  %s1179_s21 = int_to_ptr.vmem [resolvable:$true] %s1178_s21 }
 0x153   :  { %v2590_v41 = vld [vmem:[#allocation24_spill] sm:$0xff]  ;;  %v2591_v42 = vld [vmem:[#allocation39_spill] sm:$0xff]  ;;  %v2592_v51 = vld [vmem:[#allocation17_spill] sm:$0xff]  ;;  %s1503_s22 = scalar_lea.vmem %s1179_s21, 32  ;;  %p1508_p1 = scmp.lt.s32.totalorder %s1179_s21, %s1179_s21 }
 0x154   :  { %v2593_v52 = vld [vmem:[#allocation32_spill] sm:$0xff]  ;;  %v2598_v39 = vld [vmem:[#allocation49_spill] sm:$0xff]  ;;  %v2602_v61 = vld [vmem:[#allocation50_spill] sm:$0xff]  ;;  %p1504_p0 = scmp.ne.s32.totalorder %s1179_s21, %s1503_s22  ;;  %p1509_p2 = scmp.lt.s32.totalorder %s1503_s22, %s1503_s22 }
 0x155   :  { %1226 = vmatpush3.bf16.msra.mxu1 %v1662_v17  ;;  %1248 = vmatpush3.bf16.msra.mxu0 %v1582_v1  ;;  %v567_v0 = vld [vmem:[#allocation3] sm:$0x2]  ;;  %v672_v37 = vld [vmem:[#allocation3] sm:$0x4]  ;;  %v2599_v46 = vld [vmem:[#allocation65_spill] sm:$0xff] }
 0x156   :  { %1227 = vmatprep.subr.bf16.mxu1 %v1707_v26  ;;  %1249 = vmatprep.subr.bf16.mxu0 %v1627_v10  ;;  %v568_v24 = vld [vmem:[#allocation3 + $0x8] sm:$0x2]  ;;  %v550_v8 = vld [vmem:[#allocation3 + $0x8] sm:$0x1]  ;;  %v588_v1 = vrot.slane %v567_v0, 1  ;;  %v2565_v10 = vld [vmem:[#allocation25_spill] sm:$0xff]  ;;  %p1510_p3 = por %p1509_p2, %p1508_p1 }
 0x157   :  { %v589_v32 = vrot.slane %v568_v24, 1  ;;  %664 = vmatprep.mubr.bf16.mxu0 %v550_v8  ;;  %v2573_v17 = vld [vmem:[#allocation27_spill] sm:$0xff]  ;;  %v2581_v26 = vld [vmem:[#allocation29_spill] sm:$0xff]  ;;  %v693_v43 = vrot.slane %v672_v37, 2  ;;  %v2595_v57 = vld [vmem:[#allocation64_spill] sm:$0xff] }
 0x158   :  { %v805_v49 = vld [vmem:[#allocation3 + $0x8] sm:$0x10]  ;;  %v871_v50 = vld [vmem:[#allocation3 + $0x8] sm:$0x20]  ;;  %v2596_v47 = vld [vmem:[#allocation40_spill] sm:$0xff]  ;;  %p1511_p4 = pnand %p1510_p3, %p1504_p0 }
 0x159   :  { %1228 = vmatpush3.bf16.msra.mxu1 %v1667_v18  ;;  %1250 = vmatpush3.bf16.msra.mxu0 %v1587_v2  ;;  %v673_v2 = vld [vmem:[#allocation3 + $0x8] sm:$0x4]  ;;  %v2574_v18 = vld [vmem:[#allocation20_spill] sm:$0xff]  ;;  %v826_v58 = vrot.slane %v805_v49, 4  ;;  %v892_v60 = vrot.slane %v871_v50, 5  ;;  %v2603_v62 = vld [vmem:[#allocation66_spill] sm:$0xff] }
 0x15a   :  { %1229 = vmatprep.subr.bf16.mxu1 %v1712_v27  ;;  %1251 = vmatprep.subr.bf16.mxu0 %v1632_v11  ;;  %v2566_v11 = vld [vmem:[#allocation18_spill] sm:$0xff]  ;;  %v2597_v54 = vld [vmem:[#allocation56_spill] sm:$0xff]  ;;  %v2600_v53 = vld [vmem:[#allocation41_spill] sm:$0xff] }
 0x15b   :  { %624 = vmatprep.mubr.bf16.mxu1 %v589_v32  ;;  %v2582_v27 = vld [vmem:[#allocation22_spill] sm:$0xff]  ;;  %v2601_v38 = vld [vmem:[#allocation57_spill] sm:$0xff]  ;;  %v2606_v36 = vld [vmem:[#allocation51_spill] sm:$0xff] }
 0x15c   :  { %v2604_v45 = vld [vmem:[#allocation42_spill] sm:$0xff]  ;;  %v2607_v63 = vld [vmem:[#allocation67_spill] sm:$0xff]  ;;  %v2610_v24 = vld [vmem:[#allocation52_spill] sm:$0xff] }
 0x15d   :  { %1230 = vmatpush3.bf16.msra.mxu1 %v1672_v19  ;;  %1252 = vmatpush3.bf16.msra.mxu0 %v1592_v3  ;;  %v739_v3 = vld [vmem:[#allocation3 + $0x8] sm:$0x8]  ;;  %v2575_v19 = vld [vmem:[#allocation35_spill] sm:$0xff]  ;;  %v2605_v55 = vld [vmem:[#allocation58_spill] sm:$0xff] }
 0x15e   :  { %1231 = vmatprep.subr.bf16.mxu1 %v1717_v28  ;;  %1253 = vmatprep.subr.bf16.mxu0 %v1637_v12  ;;  %v760_v9 = vrot.slane %v739_v3, 3  ;;  %v2567_v12 = vld [vmem:[#allocation33_spill] sm:$0xff]  ;;  %v2608_v44 = vld [vmem:[#allocation43_spill] sm:$0xff]  ;;  %v2611_v8 = vld [vmem:[#allocation68_spill] sm:$0xff] }
 0x15f   :  { %v2583_v28 = vld [vmem:[#allocation37_spill] sm:$0xff]  ;;  %v2609_v59 = vld [vmem:[#allocation59_spill] sm:$0xff]  ;;  %v2612_v32 = vld [vmem:[#allocation44_spill] sm:$0xff] }
 0x160   :  { %v2613_v0 = vld [vmem:[#allocation60_spill] sm:$0xff]  ;;  %v2616_v3 = vld [vmem:[#allocation45_spill] sm:$0xff]  ;;  %v2638_v37 = vld [vmem:[#allocation83_spill] sm:$0xff] }
 0x161   :  { %1232 = vmatpush3.bf16.msra.mxu1 %v1677_v20  ;;  %1254 = vmatpush3.bf16.msra.mxu0 %v1597_v4  ;;  %v549_v4 = vld [vmem:[#allocation3] sm:$0x1]  ;;  %v2576_v20 = vld [vmem:[#allocation13_spill] sm:$0xff]  ;;  %v2644_v49 = vld [vmem:[#allocation76_spill] sm:$0xff] }
 0x162   :  { %1233 = vmatprep.subr.bf16.mxu1 %v1722_v29  ;;  %1255 = vmatprep.subr.bf16.mxu0 %v1642_v13  ;;  %v2569_v13 = vld [vmem:[#allocation26_spill] sm:$0xff]  ;;  %v2584_v29 = vld [vmem:[#allocation15_spill] sm:$0xff]  ;;  %v2645_v50 = vld [vmem:[#allocation92_spill] sm:$0xff] }
 0x165   :  { %1234 = vmatpush3.bf16.msra.mxu1 %v1682_v21  ;;  %1256 = vmatpush3.bf16.msra.mxu0 %v1602_v5  ;;  %v694_v5 = vrot.slane %v673_v2, 2  ;;  %v2577_v21 = vld [vmem:[#allocation28_spill] sm:$0xff]  ;;  %v2615_v2 = vld [vmem:[#allocation69_spill] sm:$0xff] }
 0x166   :  { %1235 = vmatprep.subr.bf16.mxu1 %v1727_v30  ;;  %1257 = vmatprep.subr.bf16.mxu0 %v1647_v14  ;;  %v2570_v14 = vld [vmem:[#allocation19_spill] sm:$0xff]  ;;  %v2585_v30 = vld [vmem:[#allocation30_spill] sm:$0xff] }
 0x169   :  { %1236 = vmatpush3.bf16.msra.mxu1 %v1687_v22  ;;  %1258 = vmatpush3.bf16.msra.mxu0 %v1607_v6  ;;  %v2564_v6 = vld [vmem:[#allocation10_spill] sm:$0xff]  ;;  %v2578_v22 = vld [vmem:[#allocation21_spill] sm:$0xff] }
 0x16a   :  { %1237 = vmatprep.subr.bf16.mxu1 %v1732_v31  ;;  %1259 = vmatprep.subr.bf16.mxu0 %v1652_v15  ;;  %v2571_v15 = vld [vmem:[#allocation34_spill] sm:$0xff]  ;;  %v2586_v31 = vld [vmem:[#allocation23_spill] sm:$0xff] }
 0x16d   :  { %1238 = vmatpush3.bf16.msra.mxu1 %v1692_v23  ;;  %1260 = vmatpush3.bf16.msra.mxu0 %v1612_v7  ;;  %v2568_v7 = vld [vmem:[#allocation11_spill] sm:$0xff]  ;;  %v2579_v23 = vld [vmem:[#allocation36_spill] sm:$0xff] }
 0x16e   :  { %1267 = vmatprep.subr.bf16.mxu1 %v1777_v40  ;;  %1289 = vmatprep.subr.bf16.mxu0 %v1857_v56  ;;  %v738_v40 = vld [vmem:[#allocation3] sm:$0x8] }
 0x16f   :  { %v759_v48 = vrot.slane %v738_v40, 3  ;;  %v2594_v56 = vld [vmem:[#allocation48_spill] sm:$0xff]  ;;  %v2639_v40 = vld [vmem:[#allocation99_spill] sm:$0xff] }
 0x170   :  { %625 = vmatmul.mubr.bf16.vlgmr.msra.gmra.mrb[0].mxu1 %v588_v1  ;;  %665 = vmatmul.mubr.bf16.vlgmr.msra.gmra.mrb[16].mxu0 %v549_v4  ;;  %v2614_v1 = vld [vmem:[#allocation53_spill] sm:$0xff] }
 0x171   :  { %1268 = vmatpush3.bf16.msra.mxu1 %v2564_v6  ;;  %1290 = vmatpush3.bf16.msra.mxu0 %v2565_v10  ;;  %v2617_v4 = vld [vmem:[#allocation61_spill] sm:$0xff]  ;;  %v2620_v6 = vld [vmem:[#allocation46_spill] sm:$0xff] }
 0x172   :  { %1269 = vmatprep.subr.bf16.mxu1 %v2566_v11  ;;  %1291 = vmatprep.subr.bf16.mxu0 %v2567_v12  ;;  %v2621_v10 = vld [vmem:[#allocation62_spill] sm:$0xff]  ;;  %v804_v11 = vld [vmem:[#allocation3] sm:$0x10]  ;;  %v870_v12 = vld [vmem:[#allocation3] sm:$0x20] }
 0x173   :  { %729 = vmatprep.mubr.bf16.mxu1 %v694_v5  ;;  %795 = vmatprep.mubr.bf16.mxu0 %v760_v9  ;;  %v2618_v5 = vld [vmem:[#allocation54_spill] sm:$0xff] }
 0x174   :  { %v2619_v9 = vld [vmem:[#allocation70_spill] sm:$0xff] }
 0x175   :  { %1270 = vmatpush3.bf16.msra.mxu1 %v2568_v7  ;;  %1292 = vmatpush3.bf16.msra.mxu0 %v2569_v13  ;;  %v2622_v7 = vld [vmem:[#allocation55_spill] sm:$0xff] }
 0x176   :  { %1271 = vmatprep.subr.bf16.mxu1 %v2570_v14  ;;  %1293 = vmatprep.subr.bf16.mxu0 %v2571_v15  ;;  %v2623_v13 = vld [vmem:[#allocation71_spill] sm:$0xff]  ;;  %v825_v14 = vrot.slane %v804_v11, 4  ;;  %v891_v15 = vrot.slane %v870_v12, 5  ;;  %v1087_v11 = vld [vmem:[%s2467_s5 + $0x50] sm:$0xff] }
 0x177   :  { %v1088_v12 = vld [vmem:[%s2467_s5 + $0x58] sm:$0xff] }
 0x179   :  { %1272 = vmatpush3.bf16.msra.mxu1 %v2572_v16  ;;  %1294 = vmatpush3.bf16.msra.mxu0 %v2573_v17  ;;  %v937_v16 = vld [vmem:[#allocation3 + $0x8] sm:$0x40]  ;;  %v1003_v17 = vld [vmem:[#allocation3 + $0x8] sm:$0x80] }
 0x17a   :  { %1273 = vmatprep.subr.bf16.mxu1 %v2574_v18  ;;  %1295 = vmatprep.subr.bf16.mxu0 %v2575_v19  ;;  %v2624_v18 = vld [vmem:[#allocation47_spill] sm:$0xff] }
 0x17b   :  { %v2625_v19 = vld [vmem:[#allocation63_spill] sm:$0xff] }
 0x17d   :  { %1274 = vmatpush3.bf16.msra.mxu1 %v2576_v20  ;;  %1296 = vmatpush3.bf16.msra.mxu0 %v2577_v21  ;;  %v2626_v20 = vld [vmem:[#allocation80_spill] sm:$0xff] }
 0x17e   :  { %1275 = vmatprep.subr.bf16.mxu1 %v2578_v22  ;;  %1297 = vmatprep.subr.bf16.mxu0 %v2579_v23  ;;  %v2627_v21 = vld [vmem:[#allocation96_spill] sm:$0xff]  ;;  %v958_v22 = vrot.slane %v937_v16, 6  ;;  %v1024_v23 = vrot.slane %v1003_v17, 7  ;;  %v1091_v16 = vld [vmem:[%s2467_s5 + $0x70] sm:$0xff]  ;;  %v1092_v17 = vld [vmem:[%s2467_s5 + $0x78] sm:$0xff] }
 0x181   :  { %1276 = vmatpush3.bf16.msra.mxu1 %v2580_v25  ;;  %1298 = vmatpush3.bf16.msra.mxu0 %v2581_v26  ;;  %v2628_v25 = vld [vmem:[#allocation72_spill] sm:$0xff] }
 0x182   :  { %1277 = vmatprep.subr.bf16.mxu1 %v2582_v27  ;;  %1299 = vmatprep.subr.bf16.mxu0 %v2583_v28  ;;  %v2629_v26 = vld [vmem:[#allocation88_spill] sm:$0xff]  ;;  %v2630_v27 = vld [vmem:[#allocation81_spill] sm:$0xff] }
 0x183   :  { %v2631_v28 = vld [vmem:[#allocation97_spill] sm:$0xff] }
 0x185   :  { %1278 = vmatpush3.bf16.msra.mxu1 %v2584_v29  ;;  %1300 = vmatpush3.bf16.msra.mxu0 %v2585_v30  ;;  %v2632_v29 = vld [vmem:[#allocation73_spill] sm:$0xff] }
 0x186   :  { %1279 = vmatprep.subr.bf16.mxu1 %v2586_v31  ;;  %1301 = vmatprep.subr.bf16.mxu0 %v2587_v33  ;;  %v2633_v30 = vld [vmem:[#allocation89_spill] sm:$0xff]  ;;  %v2634_v31 = vld [vmem:[#allocation82_spill] sm:$0xff] }
 0x187   :  { %v2635_v33 = vld [vmem:[#allocation98_spill] sm:$0xff] }
 0x189   :  { %1280 = vmatpush3.bf16.msra.mxu1 %v2588_v34  ;;  %1302 = vmatpush3.bf16.msra.mxu0 %v2589_v35  ;;  %v2636_v34 = vld [vmem:[#allocation74_spill] sm:$0xff] }
 0x18a   :  { %1281 = vmatprep.subr.bf16.mxu1 %v2590_v41  ;;  %1303 = vmatprep.subr.bf16.mxu0 %v2591_v42  ;;  %v2637_v35 = vld [vmem:[#allocation90_spill] sm:$0xff]  ;;  %v2640_v41 = vld [vmem:[#allocation75_spill] sm:$0xff] }
 0x18b   :  { %v2641_v42 = vld [vmem:[#allocation91_spill] sm:$0xff] }
 0x18d   :  { %1282 = vmatpush3.bf16.msra.mxu1 %v2592_v51  ;;  %1304 = vmatpush3.bf16.msra.mxu0 %v2593_v52  ;;  %v2646_v51 = vld [vmem:[#allocation85_spill] sm:$0xff] }
 0x18e   :  { %1311 = vmatprep.subr.bf16.mxu1 %v2594_v56  ;;  %1333 = vmatprep.subr.bf16.mxu0 %v2595_v57  ;;  %v2647_v52 = vld [vmem:[#allocation101_spill] sm:$0xff] }
 0x18f   :  { %v2648_v56 = vld [vmem:[#allocation77_spill] sm:$0xff] }
 0x190   :  { %730 = vmatmul.mubr.bf16.vlgmr.msra.gmra.mrb[4].mxu1 %v693_v43  ;;  %796 = vmatmul.mubr.bf16.vlgmr.msra.gmra.mrb[20].mxu0 %v759_v48  ;;  %v2642_v43 = vld [vmem:[#allocation84_spill] sm:$0xff]  ;;  %v2649_v57 = vld [vmem:[#allocation93_spill] sm:$0xff] }
 0x191   :  { %1312 = vmatpush3.bf16.msra.mxu1 %v2596_v47  ;;  %1334 = vmatpush3.bf16.msra.mxu0 %v2597_v54  ;;  %v2643_v48 = vld [vmem:[#allocation100_spill] sm:$0xff]  ;;  %v2652_v47 = vld [vmem:[#allocation78_spill] sm:$0xff] }
 0x192   :  { %1313 = vmatprep.subr.bf16.mxu1 %v2598_v39  ;;  %1335 = vmatprep.subr.bf16.mxu0 %v2599_v46  ;;  %v2653_v54 = vld [vmem:[#allocation94_spill] sm:$0xff]  ;;  %v936_v39 = vld [vmem:[#allocation3] sm:$0x40]  ;;  %v1002_v46 = vld [vmem:[#allocation3] sm:$0x80] }
 0x193   :  { %861 = vmatprep.mubr.bf16.mxu1 %v826_v58  ;;  %927 = vmatprep.mubr.bf16.mxu0 %v892_v60  ;;  %v2650_v58 = vld [vmem:[#allocation86_spill] sm:$0xff] }
 0x194   :  { %v2651_v60 = vld [vmem:[#allocation102_spill] sm:$0xff] }
 0x195   :  { %1314 = vmatpush3.bf16.msra.mxu1 %v2600_v53  ;;  %1336 = vmatpush3.bf16.msra.mxu0 %v2601_v38  ;;  %v2654_v53 = vld [vmem:[#allocation87_spill] sm:$0xff] }
 0x196   :  { %1315 = vmatprep.subr.bf16.mxu1 %v2602_v61  ;;  %1337 = vmatprep.subr.bf16.mxu0 %v2603_v62  ;;  %v2655_v38 = vld [vmem:[#allocation103_spill] sm:$0xff]  ;;  %v957_v61 = vrot.slane %v936_v39, 6  ;;  %v1023_v62 = vrot.slane %v1002_v46, 7 }
 0x199   :  { %1316 = vmatpush3.bf16.msra.mxu1 %v2604_v45  ;;  %1338 = vmatpush3.bf16.msra.mxu0 %v2605_v55  ;;  %v2656_v45 = vld [vmem:[#allocation79_spill] sm:$0xff] }
 0x19a   :  { %1317 = vmatprep.subr.bf16.mxu1 %v2606_v36  ;;  %1339 = vmatprep.subr.bf16.mxu0 %v2607_v63  ;;  %v2657_v55 = vld [vmem:[#allocation95_spill] sm:$0xff]  ;;  %v1078_v63 = vld [vmem:[%s2467_s5 + $0x8] sm:$0xff] }
 0x19b   :  { %v1077_v36 = vld [vmem:[%s2467_s5] sm:$0xff] }
 0x19d   :  { %1318 = vmatpush3.bf16.msra.mxu1 %v2608_v44  ;;  %1340 = vmatpush3.bf16.msra.mxu0 %v2609_v59  ;;  %v1079_v44 = vld [vmem:[%s2467_s5 + $0x10] sm:$0xff]  ;;  %v1530_v59 = vmov 0.0|0.0  }
 0x19e   :  { %1319 = vmatprep.subr.bf16.mxu1 %v2610_v24  ;;  %1341 = vmatprep.subr.bf16.mxu0 %v2611_v8  ;;  %v1452_v24 = vpack.c.bf16 %v1078_v63, %v1077_v36  ;;  %v1080_v8 = vld [vmem:[%s2467_s5 + $0x18] sm:$0xff] }
 0x1a1   :  { %1320 = vmatpush3.bf16.msra.mxu1 %v2612_v32  ;;  %1342 = vmatpush3.bf16.msra.mxu0 %v2613_v0  ;;  %v1455_v32 = vpack.c.bf16 %v1080_v8, %v1079_v44  ;;  %v1081_v0 = vld [vmem:[%s2467_s5 + $0x20] sm:$0xff] }
 0x1a2   :  { %1321 = vmatprep.subr.bf16.mxu1 %v2614_v1  ;;  %1343 = vmatprep.subr.bf16.mxu0 %v2615_v2  ;;  %v1082_v1 = vld [vmem:[%s2467_s5 + $0x28] sm:$0xff] }
 0x1a3   :  { %v1458_v2 = vpack.c.bf16 %v1082_v1, %v1081_v0  ;;  %v1220_v1 = vld [vmem:[%s2466_s4] ss:$0 sm:$0xff] }
 0x1a5   :  { %1322 = vmatpush3.bf16.msra.mxu1 %v2616_v3  ;;  %1344 = vmatpush3.bf16.msra.mxu0 %v2617_v4  ;;  %v1083_v3 = vld [vmem:[%s2467_s5 + $0x30] sm:$0xff]  ;;  %v1084_v4 = vld [vmem:[%s2467_s5 + $0x38] sm:$0xff] }
 0x1a6   :  { %1323 = vmatprep.subr.bf16.mxu1 %v2618_v5  ;;  %1345 = vmatprep.subr.bf16.mxu0 %v2619_v9  ;;  %v1461_v5 = vpack.c.bf16 %v1084_v4, %v1083_v3  ;;  %v1085_v9 = vld [vmem:[%s2467_s5 + $0x40] sm:$0xff] }
 0x1a9   :  { %1324 = vmatpush3.bf16.msra.mxu1 %v2620_v6  ;;  %1346 = vmatpush3.bf16.msra.mxu0 %v2621_v10  ;;  %v1086_v6 = vld [vmem:[%s2467_s5 + $0x48] sm:$0xff] }
 0x1aa   :  { %1325 = vmatprep.subr.bf16.mxu1 %v2622_v7  ;;  %1347 = vmatprep.subr.bf16.mxu0 %v2623_v13  ;;  %v1464_v10 = vpack.c.bf16 %v1086_v6, %v1085_v9  ;;  %v1467_v7 = vpack.c.bf16 %v1088_v12, %v1087_v11  ;;  %v1089_v13 = vld [vmem:[%s2467_s5 + $0x60] sm:$0xff] }
 0x1ad   :  { %1326 = vmatpush3.bf16.msra.mxu1 %v2624_v18  ;;  %1348 = vmatpush3.bf16.msra.mxu0 %v2625_v19  ;;  %v1473_v18 = vpack.c.bf16 %v1092_v17, %v1091_v16  ;;  %v1532_v19 = vmov 0.0  }
 0x1ae   :  { %1355 = vmatprep.subr.bf16.mxu1 %v2626_v20  ;;  %1377 = vmatprep.subr.bf16.mxu0 %v2627_v21 }
 0x1b0   :  { %862 = vmatmul.mubr.bf16.vlgmr.msra.gmra.mrb[8].mxu1 %v825_v14  ;;  %928 = vmatmul.mubr.bf16.vlgmr.msra.gmra.mrb[24].mxu0 %v891_v15  ;;  %v1090_v14 = vld [vmem:[%s2467_s5 + $0x68] sm:$0xff] }
 0x1b1   :  { %1356 = vmatpush3.bf16.msra.mxu1 %v2628_v25  ;;  %1378 = vmatpush3.bf16.msra.mxu0 %v2629_v26  ;;  %v1470_v15 = vpack.c.bf16 %v1090_v14, %v1089_v13 }
 0x1b2   :  { %1357 = vmatprep.subr.bf16.mxu1 %v2630_v27  ;;  %1379 = vmatprep.subr.bf16.mxu0 %v2631_v28 }
 0x1b3   :  { %993 = vmatprep.mubr.bf16.mxu1 %v958_v22  ;;  %1059 = vmatprep.mubr.bf16.mxu0 %v1024_v23 }
 0x1b5   :  { %1358 = vmatpush3.bf16.msra.mxu1 %v2632_v29  ;;  %1380 = vmatpush3.bf16.msra.mxu0 %v2633_v30 }
 0x1b6   :  { %1359 = vmatprep.subr.bf16.mxu1 %v2634_v31  ;;  %1381 = vmatprep.subr.bf16.mxu0 %v2635_v33 }
 0x1b9   :  { %1360 = vmatpush3.bf16.msra.mxu1 %v2636_v34  ;;  %1382 = vmatpush3.bf16.msra.mxu0 %v2637_v35 }
 0x1ba   :  { %1361 = vmatprep.subr.bf16.mxu1 %v2638_v37  ;;  %1383 = vmatprep.subr.bf16.mxu0 %v2639_v40 }
 0x1bd   :  { %1362 = vmatpush3.bf16.msra.mxu1 %v2640_v41  ;;  %1384 = vmatpush3.bf16.msra.mxu0 %v2641_v42 }
 0x1be   :  { %1363 = vmatprep.subr.bf16.mxu1 %v2642_v43  ;;  %1385 = vmatprep.subr.bf16.mxu0 %v2643_v48 }
 0x1c1   :  { %1364 = vmatpush3.bf16.msra.mxu1 %v2644_v49  ;;  %1386 = vmatpush3.bf16.msra.mxu0 %v2645_v50 }
 0x1c2   :  { %1365 = vmatprep.subr.bf16.mxu1 %v2646_v51  ;;  %1387 = vmatprep.subr.bf16.mxu0 %v2647_v52 }
 0x1c5   :  { %1366 = vmatpush3.bf16.msra.mxu1 %v2648_v56  ;;  %1388 = vmatpush3.bf16.msra.mxu0 %v2649_v57 }
 0x1c6   :  { %1367 = vmatprep.subr.bf16.mxu1 %v2650_v58  ;;  %1389 = vmatprep.subr.bf16.mxu0 %v2651_v60 }
 0x1c9   :  { %1368 = vmatpush3.bf16.msra.mxu1 %v2652_v47  ;;  %1390 = vmatpush3.bf16.msra.mxu0 %v2653_v54 }
 0x1ca   :  { %1369 = vmatprep.subr.bf16.mxu1 %v2654_v53  ;;  %1391 = vmatprep.subr.bf16.mxu0 %v2655_v38 }
 0x1cd   :  { %1370 = vmatpush3.bf16.msra.mxu1 %v2656_v45  ;;  %1392 = vmatpush3.bf16.msra.mxu0 %v2657_v55 }
 0x1ce   :  { %1451 = vmatprep.subr.bf16.mxu1 %v1530_v59 }
 0x1d0   :  { %994 = vmatmul.mubr.bf16.vlgmr.msra.gmra.mrb[12].mxu1 %v957_v61  ;;  %1060 = vmatmul.mubr.bf16.vlgmr.msra.gmra.mrb[28].mxu0 %v1023_v62 }
 0x1d1   :  { %1453 = vmatpush3.bf16.msra.mxu1 %v1452_v24  ;;  %1448 = vmatprep.mubr.msk.f32.mxu1 %vm1531_vm1, %v1532_v19 }
 0x1d2   :  { %1454 = vmatprep.subr.bf16.mxu1 %v1530_v59 }
 0x1d5   :  { %1456 = vmatpush3.bf16.msra.mxu1 %v1455_v32 }
 0x1d6   :  { %1457 = vmatprep.subr.bf16.mxu1 %v1530_v59 }
 0x1d9   :  { %1459 = vmatpush3.bf16.msra.mxu1 %v1458_v2 }
 0x1da   :  { %1460 = vmatprep.subr.bf16.mxu1 %v1530_v59 }
 0x1dd   :  { %1462 = vmatpush3.bf16.msra.mxu1 %v1461_v5  ;;  %v1221_v5 = vld [vmem:[%s2468_s6] ss:$0 sm:$0xff] }
 0x1de   :  { %1463 = vmatprep.subr.bf16.mxu1 %v1530_v59 }
 0x1e1   :  { %1465 = vmatpush3.bf16.msra.mxu1 %v1464_v10 }
 0x1e2   :  { %1466 = vmatprep.subr.bf16.mxu1 %v1530_v59 }
 0x1e5   :  { %1468 = vmatpush3.bf16.msra.mxu1 %v1467_v7 }
 0x1e6   :  { %1469 = vmatprep.subr.bf16.mxu1 %v1530_v59 }
 0x1e9   :  { %1471 = vmatpush3.bf16.msra.mxu1 %v1470_v15 }
 0x1ea   :  { %1472 = vmatprep.subr.bf16.mxu1 %v1530_v59 }
 0x1ed   :  { %1474 = vmatpush3.bf16.msra.mxu1 %v1473_v18 }
 0x243   :  { %v1239_v20 = vpop.f32.mrb[0].mxu1  ;;  %v1261_v21 = vpop.f32.mrb[16].mxu0 }
 0x244   :  { %v1240_v22 = vpop.f32.mrb[1].mxu1  ;;  %v1262_v23 = vpop.f32.mrb[17].mxu0 }
 0x245   :  { %v1241_v25 = vadd.f32 %v1240_v22, %v1239_v20  ;;  %v1263_v26 = vadd.f32 %v1262_v23, %v1261_v21  ;;  %v1242_v27 = vpop.f32.mrb[2].mxu1  ;;  %v1264_v28 = vpop.f32.mrb[18].mxu0 }
 0x246   :  { %v1243_v29 = vpop.f32.mrb[3].mxu1  ;;  %v1265_v30 = vpop.f32.mrb[19].mxu0 }
 0x247   :  { %v667_v31 = vadd.f32 %v1263_v26, %v1241_v25 }
 0x263   :  { %v1283_v33 = vpop.f32.mrb[4].mxu1  ;;  %v1305_v34 = vpop.f32.mrb[20].mxu0 }
 0x264   :  { %v1284_v35 = vpop.f32.mrb[5].mxu1  ;;  %v1306_v37 = vpop.f32.mrb[21].mxu0 }
 0x265   :  { %v1285_v40 = vadd.f32 %v1284_v35, %v1283_v33  ;;  %v1307_v41 = vadd.f32 %v1306_v37, %v1305_v34  ;;  %v1286_v42 = vpop.f32.mrb[6].mxu1  ;;  %v1308_v43 = vpop.f32.mrb[22].mxu0 }
 0x266   :  { %v1287_v48 = vpop.f32.mrb[7].mxu1  ;;  %v1309_v49 = vpop.f32.mrb[23].mxu0 }
 0x267   :  { %v737_v50 = vadd.f32 %v1285_v40, %v667_v31 }
 0x269   :  { %v803_v51 = vadd.f32 %v1307_v41, %v737_v50 }
 0x283   :  { %v1327_v52 = vpop.f32.mrb[8].mxu1  ;;  %v1349_v56 = vpop.f32.mrb[24].mxu0 }
 0x284   :  { %v1328_v57 = vpop.f32.mrb[9].mxu1  ;;  %v1350_v58 = vpop.f32.mrb[25].mxu0 }
 0x285   :  { %v1329_v60 = vadd.f32 %v1328_v57, %v1327_v52  ;;  %v1351_v47 = vadd.f32 %v1350_v58, %v1349_v56  ;;  %v1330_v54 = vpop.f32.mrb[10].mxu1  ;;  %v1352_v39 = vpop.f32.mrb[26].mxu0 }
 0x286   :  { %v1331_v46 = vpop.f32.mrb[11].mxu1  ;;  %v1353_v53 = vpop.f32.mrb[27].mxu0 }
 0x287   :  { %v869_v38 = vadd.f32 %v1329_v60, %v803_v51 }
 0x289   :  { %v935_v61 = vadd.f32 %v1351_v47, %v869_v38 }
 0x2a3   :  { %v1371_v62 = vpop.f32.mrb[12].mxu1  ;;  %v1393_v45 = vpop.f32.mrb[28].mxu0 }
 0x2a4   :  { %v1372_v55 = vpop.f32.mrb[13].mxu1  ;;  %v1394_v36 = vpop.f32.mrb[29].mxu0 }
 0x2a5   :  { %v1373_v63 = vadd.f32 %v1372_v55, %v1371_v62  ;;  %v1395_v44 = vadd.f32 %v1394_v36, %v1393_v45  ;;  %v1374_v59 = vpop.f32.mrb[14].mxu1  ;;  %v1396_v24 = vpop.f32.mrb[30].mxu0 }
 0x2a6   :  { %v1375_v8 = vpop.f32.mrb[15].mxu1  ;;  %v1397_v32 = vpop.f32.mrb[31].mxu0 }
 0x2a7   :  { %v1001_v0 = vadd.f32 %v1373_v63, %v935_v61 }
 0x2a9   :  { %v1067_v2 = vadd.f32 %v1395_v44, %v1001_v0 }
 0x2ab   :  { %v1075_v3 = vadd.f32 %v1220_v1, %v1067_v2 }
 0x2ad   :  { %v1076_v4 = vmax.f32 %v1075_v3, 0.0 }
 0x2af   :  { %1449 = vmatmul.mubr.f32.vlgmr.msra.gmra.mrb[16].mxu1 %v1076_v4 }
 0x382   :  { %v1166_v9 = vpop.f32.mrb[16].mxu1 }
 0x383   :  { %v1167_v6 = vadd.f32 %v1221_v5, %v1166_v9  ;;  %v1450_v10 = vpop.f32.mrb[17].mxu1 }
 0x385   :  { %1171 = vst.msk [vmem:[#allocation5] sm:$0x3] %vm1170_vm2, %v1167_v6 }
 0x386   :  { %1514 = shalt.err (!%p1511_p4)
}
 0x387   :  { %s1515_s24 = scalar_lea.hbm %s2469_s7, 32 }
 0x388   :  { %p1516_p5 = scmp.ne.s32.totalorder %s2469_s7, %s1515_s24  ;;  %p1519_p6 = scmp.lt.u32.totalorder %s1515_s24, %s2469_s7 }
 0x38a   :  { %p1521_p7 = pnand %p1519_p6, %p1516_p5 }
 0x38c   :  { %1524 = shalt.err (!%p1521_p7)
}
 0x38d   :  { %1181 = dma.vmem_to_hbm [thread:$0]  %s1179_s21, 32, %s2469_s7, [#allocation6]  }
 0x38e   :  { %1527 = dma.done.wait [#allocation6], 32  }
 0x38f   :  { %1528 = vsyncadd [#allocation6], 4294967264 }
 0x390   :  { %1185 = vsyncpa [#allocation6], 1 }
 0x391   :  { %1186 = vsyncmov [#allocation4] }
 0x394   :  { %s1187_s30 = vpop.sfrf %1186 }
 0x395   :  { %p1222_p8 = scmp.ne.s32.totalorder %s1187_s30, 0 }
 0x397   :  { %1191 = shalt.err (%p1222_p8)  }

</bundles_post_ra>
